<compile_context>
chip_gen: v6e
topology: v6e:2x2x1
jax: 0.10.0
libtpu: 0.0.40
codegen_flags: <defaults>
</compile_context>

<pallas_src>
import functools

import jax
import jax.numpy as jnp
from jax.experimental import pallas as pl
from jax.experimental.pallas import tpu as pltpu


def _mlp_comp_kernel(z_ref, a_ref, w1_ref, b1_ref, w2_ref, b2_ref, out_ref,
                     *, latent_size):
    """fc1 (split-K over [z | actions]) + bias + ReLU + fc2 + bias.

    All matmuls accumulate in f32 on the MXU; bias/ReLU epilogue is f32 VPU.
    Activations are cast to the weight dtype here (no-op for f32 weights), so
    reduced-precision mode never adds wrapper-side HBM traffic.
    """
    w_dtype = w1_ref.dtype
    z = z_ref[...].astype(w_dtype)
    a = a_ref[...].astype(w_dtype)
    # concat([z, a]) @ w1  ==  z @ w1[:L]  +  a @ w1[L:]   (split-K dot)
    h = jnp.dot(z, w1_ref[:latent_size, :], preferred_element_type=jnp.float32)
    h = h + jnp.dot(a, w1_ref[latent_size:, :],
                    preferred_element_type=jnp.float32)
    h = jnp.maximum(h + b1_ref[...], 0.0)                # (B,128) f32, bias+ReLU
    o = jnp.dot(h.astype(w2_ref.dtype), w2_ref[...],
                preferred_element_type=jnp.float32) + b2_ref[...]
    out_ref[...] = o.astype(out_ref.dtype)


def mlp_comp_forward(z, actions, params, latent_size, *, tile_b=4096,
                     compute_dtype=None):
    """JAX wrapper reproducing the composition MLP forward.

    z:       any shape reshapeable to (-1, latent_size)
    actions: (B, latent_size + n_actions)   -- see contract at top of file
    tile_b:  batch tile; large by default so per-step pipeline overhead is
             amortized.  Keep double-buffered (z+a+out) under the VMEM limit
             (tile_b=4096 f32 ~ 12.5 MiB incl. lane padding).
    compute_dtype: optionally run the matmuls in e.g. bf16 (weights cast in the
             wrapper, activations cast in-kernel); accumulation stays f32.
             NOTE: this also narrows the hidden activation before fc2, so it
             deviates from exact PyTorch f32 numerics.  Default None = f32.
    """
    w1, b1, w2, b2 = params          # w1: (2L+A, 128), b1: (128,), w2: (128, L), b2: (L,)

    z2 = z.reshape(-1, latent_size)
    out_dtype = z2.dtype
    B = z2.shape[0]
    a_feat = actions.shape[1]
    in_features = w1.shape[0]
    hidden = w1.shape[1]
    out_features = w2.shape[1]

    # Reduced-precision: cast ONLY the small, grid-resident weights here.
    # Never cast f32 activations in the wrapper (that would add a full extra
    # HBM pass); they are cast (if needed) inside the kernel.
    if compute_dtype is not None:
        w1 = w1.astype(compute_dtype)
        w2 = w2.astype(compute_dtype)

    # Biases stay 2-D f32 (lane-major row) so the kernel's bias add is a plain
    # broadcast over the f32 MXU result.
    b1_2d = b1.reshape(1, hidden).astype(jnp.float32)
    b2_2d = b2.reshape(1, out_features).astype(jnp.float32)

    # Batch tile must be a sublane multiple.
    tile_b = max(8, -(-int(tile_b) // 8) * 8)

    kernel = functools.partial(_mlp_comp_kernel, latent_size=latent_size)

    if B <= tile_b:
        # Single tile: grid-less pallas_call -- no pipeline prologue/epilogue,
        # no double buffering; every operand is explicitly one full VMEM block.
        vmem = pl.BlockSpec(memory_space=pltpu.MemorySpace.VMEM)
        return pl.pallas_call(
            kernel,
            out_shape=jax.ShapeDtypeStruct((B, out_features), out_dtype),
            in_specs=[vmem] * 6,
            out_specs=vmem,
        )(z2, actions, w1, b1_2d, w2, b2_2d)

    # Large batch: tile the batch axis.  No input padding / output slicing --
    # Pallas clips the last partial block, and since the MLP is row-wise the
    # garbage OOB input rows only feed output rows that are never written.
    # Weights/biases use constant index maps (block (0,0) every step) so they
    # are fetched once and stay VMEM-resident; the batch axis is "parallel"
    # (v7x megacore shards it across its 2 TensorCores when num_tiles >= 2).
    num_tiles = pl.cdiv(B, tile_b)
    out = pl.pallas_call(
        kernel,
        out_shape=jax.ShapeDtypeStruct((B, out_features), out_dtype),
        grid=(num_tiles,),
        in_specs=[
            pl.BlockSpec((tile_b, latent_size), lambda i: (i, 0)),
            pl.BlockSpec((tile_b, a_feat), lambda i: (i, 0)),
            pl.BlockSpec((in_features, hidden), lambda i: (0, 0)),
            pl.BlockSpec((1, hidden), lambda i: (0, 0)),
            pl.BlockSpec((hidden, out_features), lambda i: (0, 0)),
            pl.BlockSpec((1, out_features), lambda i: (0, 0)),
        ],
        out_specs=pl.BlockSpec((tile_b, out_features), lambda i: (i, 0)),
        compiler_params=pltpu.CompilerParams(
            dimension_semantics=("parallel",),
            # 32 MiB: above v5e's 16 MiB scoped default (128 MiB physical),
            # equal to the v6e/v7x scoped default and under v7x's 64 MiB
            # physical -- enough for tile_b up to ~8192 in f32.
            vmem_limit_bytes=32 * 1024 * 1024,
        ),
    )(z2, actions, w1, b1_2d, w2, b2_2d)
    return out


def init_params(key, n_actions, latent_size):
    """Deterministic init mirroring nn.Linear defaults (uniform +/- 1/sqrt(fan_in))."""
    input_size = 2 * latent_size + n_actions
    hidden = 128
    k1, k2, k3, k4 = jax.random.split(key, 4)
    bound1 = 1.0 / jnp.sqrt(input_size)
    bound2 = 1.0 / jnp.sqrt(hidden)
    w1 = jax.random.uniform(k1, (input_size, hidden), jnp.float32, -bound1, bound1)
    b1 = jax.random.uniform(k2, (hidden,), jnp.float32, -bound1, bound1)
    w2 = jax.random.uniform(k3, (hidden, latent_size), jnp.float32, -bound2, bound2)
    b2 = jax.random.uniform(k4, (latent_size,), jnp.float32, -bound2, bound2)
    return (w1, b1, w2, b2)


def reference_forward(z, actions, params, latent_size):
    w1, b1, w2, b2 = params
    zpa = jnp.concatenate([z.reshape(-1, latent_size), actions], axis=1)
    h = jnp.maximum(zpa @ w1 + b1, 0.0)
    return h @ w2 + b2


if __name__ == "__main__":
    n_actions = 8
    latent_size = 32

    key = jax.random.PRNGKey(0)
    kp, kz, ka, kz2, ka2 = jax.random.split(key, 5)

    params = init_params(kp, n_actions, latent_size)

    # --- small batch: grid-less single-VMEM-block path --------------------------
    batch = 8
    z = jax.random.normal(kz, (batch, latent_size), jnp.float32)
    actions = jax.random.normal(ka, (batch, latent_size + n_actions), jnp.float32)

    out = jax.block_until_ready(mlp_comp_forward(z, actions, params, latent_size))
    ref = reference_forward(z, actions, params, latent_size)
    assert out.shape == (batch, latent_size)
    assert jnp.allclose(out, ref, atol=1e-4, rtol=1e-4)

    # --- larger batch: batch-tiled grid path with VMEM-resident weights ---------
    # tile_b=256 here only to exercise the pipelined grid path (including a
    # clipped partial last block: 600 = 2*256 + 88) at test-sized shapes; the
    # production default is tile_b=4096.
    batch_l = 600
    z_l = jax.random.normal(kz2, (batch_l, latent_size), jnp.float32)
    a_l = jax.random.normal(ka2, (batch_l, latent_size + n_actions), jnp.float32)

    out_l = jax.block_until_ready(
        mlp_comp_forward(z_l, a_l, params, latent_size, tile_b=256))
    ref_l = reference_forward(z_l, a_l, params, latent_size)
    assert out_l.shape == (batch_l, latent_size)
    assert jnp.allclose(out_l, ref_l, atol=1e-4, rtol=1e-4)

    print("KERNEL_OK")
</pallas_src>

<mosaic_0001>
module attributes {stable_mosaic.version = 11 : i64} {
  func.func @_mlp_comp_kernel(%arg0: memref<8x32xf32, #tpu.memory_space<vmem>>, %arg1: memref<8x40xf32, #tpu.memory_space<vmem>>, %arg2: memref<72x128xf32, #tpu.memory_space<vmem>>, %arg3: memref<1x128xf32, #tpu.memory_space<vmem>>, %arg4: memref<128x32xf32, #tpu.memory_space<vmem>>, %arg5: memref<1x32xf32, #tpu.memory_space<vmem>>, %arg6: memref<8x32xf32, #tpu.memory_space<vmem>>) attributes {dimension_semantics = [], scalar_prefetch = 0 : i64, scratch_operands = 0 : i64, tpu.core_type = #tpu.core_type<tc>} {
    %c0 = arith.constant 0 : index
    %c0_0 = arith.constant 0 : index
    %0 = vector.load %arg0[%c0, %c0_0] : memref<8x32xf32, #tpu.memory_space<vmem>>, vector<8x32xf32>
    %c0_1 = arith.constant 0 : index
    %c0_2 = arith.constant 0 : index
    %1 = vector.load %arg1[%c0_1, %c0_2] : memref<8x40xf32, #tpu.memory_space<vmem>>, vector<8x40xf32>
    %c0_3 = arith.constant 0 : index
    %c0_4 = arith.constant 0 : index
    %2 = vector.load %arg2[%c0_3, %c0_4] : memref<72x128xf32, #tpu.memory_space<vmem>>, vector<32x128xf32>
    %cst = arith.constant dense<0.000000e+00> : vector<8x128xf32>
    %3 = tpu.matmul %0, %2, %cst {dimension_numbers = #tpu.dot_dimension_numbers<[1], [0], [0], [1], [0, 0, 1, 1], [], []>} : vector<8x32xf32>, vector<32x128xf32>, vector<8x128xf32> -> vector<8x128xf32>
    %c32 = arith.constant 32 : index
    %c0_5 = arith.constant 0 : index
    %4 = vector.load %arg2[%c32, %c0_5] : memref<72x128xf32, #tpu.memory_space<vmem>>, vector<40x128xf32>
    %cst_6 = arith.constant dense<0.000000e+00> : vector<8x128xf32>
    %5 = tpu.matmul %1, %4, %cst_6 {dimension_numbers = #tpu.dot_dimension_numbers<[1], [0], [0], [1], [0, 0, 1, 1], [], []>} : vector<8x40xf32>, vector<40x128xf32>, vector<8x128xf32> -> vector<8x128xf32>
    %6 = arith.addf %3, %5 : vector<8x128xf32>
    %c0_7 = arith.constant 0 : index
    %c0_8 = arith.constant 0 : index
    %7 = vector.load %arg3[%c0_7, %c0_8] : memref<1x128xf32, #tpu.memory_space<vmem>>, vector<1x128xf32>
    %8 = vector.broadcast %7 : vector<1x128xf32> to vector<8x128xf32>
    %9 = arith.addf %6, %8 : vector<8x128xf32>
    %cst_9 = arith.constant 0.000000e+00 : f32
    %10 = vector.broadcast %cst_9 : f32 to vector<8x128xf32>
    %11 = arith.maximumf %9, %10 : vector<8x128xf32>
    %c0_10 = arith.constant 0 : index
    %c0_11 = arith.constant 0 : index
    %12 = vector.load %arg4[%c0_10, %c0_11] : memref<128x32xf32, #tpu.memory_space<vmem>>, vector<128x32xf32>
    %cst_12 = arith.constant dense<0.000000e+00> : vector<8x32xf32>
    %13 = tpu.matmul %11, %12, %cst_12 {dimension_numbers = #tpu.dot_dimension_numbers<[1], [0], [0], [1], [0, 0, 1, 1], [], []>} : vector<8x128xf32>, vector<128x32xf32>, vector<8x32xf32> -> vector<8x32xf32>
    %c0_13 = arith.constant 0 : index
    %c0_14 = arith.constant 0 : index
    %14 = vector.load %arg5[%c0_13, %c0_14] : memref<1x32xf32, #tpu.memory_space<vmem>>, vector<1x32xf32>
    %15 = vector.broadcast %14 : vector<1x32xf32> to vector<8x32xf32>
    %16 = arith.addf %13, %15 : vector<8x32xf32>
    %c0_15 = arith.constant 0 : index
    %c0_16 = arith.constant 0 : index
    %17 = vector.load %arg6[%c0_15, %c0_16] : memref<8x32xf32, #tpu.memory_space<vmem>>, vector<8x32xf32>
    tpu.vector_store %arg6[%c0_15, %c0_16], %16 {strides = array<i32>} : memref<8x32xf32, #tpu.memory_space<vmem>>, vector<8x32xf32>,
    return
  }
}

</mosaic_0001>

<bundles_post_ra>
// kernel: tpu_custom_call.1
= control target key start
LH: loop header
LB: loop body
LE: loop exit
PB: predicated region body
PF: predicated region fallthrough
CT: control target
= control target key end

     0   :  { %v416_v1 = vmov 0.0   ;;  %vm417_vm0 = vmmov 0   ;;  %s577_s0 = inlined_call_operand.vmem [shape: f32[8,32], index: 0, kind: input, shape index: {}]   ;;  %s578_s1 = inlined_call_operand.vmem [shape: f32[8,40], index: 1, kind: input, shape index: {}]   ;;  %s579_s2 = inlined_call_operand.vmem [shape: f32[72,128], index: 2, kind: input, shape index: {}]   ;;  %s580_s3 = inlined_call_operand.vmem [shape: f32[1,128], index: 3, kind: input, shape index: {}]   ;;  %s581_s4 = inlined_call_operand.vmem [shape: f32[128,32], index: 4, kind: input, shape index: {}]   ;;  %s582_s5 = inlined_call_operand.vmem [shape: f32[1,32], index: 5, kind: input, shape index: {}]   ;;  %s583_s6 = inlined_call_operand.hbm [shape: f32[8,32], index: 6, kind: output, shape index: {}]  }
   0x1   :  { %v34_v0 = vld [vmem:[%s579_s2 + $0x40] sm:$0xff]  ;;  %332 = vmatprep.subr.mxu0 %v416_v1  ;;  %v33_v2 = vld [vmem:[%s579_s2 + $0x38] sm:$0xff]  ;;  %342 = vmatprep.mubr.msk.f32.mxu0 %vm417_vm0, %v416_v1  ;;  %v32_v3 = vld [vmem:[%s579_s2 + $0x30] sm:$0xff] }
   0x2   :  { %333 = vmatpush3.msra.mxu0 %v34_v0  ;;  %356 = vmatprep.subr.mxu1 %v416_v1  ;;  %v207_v4 = vld [vmem:[%s581_s4 + $0x78] sm:$0xff]  ;;  %v206_v5 = vld [vmem:[%s581_s4 + $0x70] sm:$0xff]  ;;  %v31_v6 = vld [vmem:[%s579_s2 + $0x28] sm:$0xff] }
   0x3   :  { %334 = vmatprep.subr.mxu0 %v416_v1  ;;  %388 = vmatprep.mubr.msk.f32.mxu1 %vm417_vm0, %v416_v1  ;;  %v205_v7 = vld [vmem:[%s581_s4 + $0x68] sm:$0xff] }
   0x4   :  { %335 = vmatpush3.msra.mxu0 %v33_v2  ;;  %357 = vmatpush3.msra.mxu1 %v207_v4 }
   0x5   :  { %336 = vmatprep.subr.mxu0 %v416_v1  ;;  %358 = vmatprep.subr.mxu1 %v416_v1 }
   0x6   :  { %337 = vmatpush3.msra.mxu0 %v32_v3  ;;  %359 = vmatpush3.msra.mxu1 %v206_v5 }
   0x7   :  { %11 = vsyncpa [#allocation3], 0  ;;  %338 = vmatprep.subr.mxu0 %v416_v1  ;;  %v30_v8 = vld [vmem:[%s579_s2 + $0x20] sm:$0xff]  ;;  %360 = vmatprep.subr.mxu1 %v416_v1  ;;  %vm35_vm1 = vcmask 326656   ;;  %v29_v11 = vld [vmem:[%s579_s2 + $0x18] sm:$0xff]  ;;  %vm109_vm2 = vcmask 261120  }
   0x8   :  { %v204_v9 = vld [vmem:[%s581_s4 + $0x60] sm:$0xff]  ;;  %339 = vmatpush3.msra.mxu0 %v31_v6  ;;  %361 = vmatpush3.msra.mxu1 %v205_v7  ;;  %v28_v12 = vld [vmem:[%s579_s2 + $0x10] sm:$0xff]  ;;  %v203_v13 = vld [vmem:[%s581_s4 + $0x58] sm:$0xff]  ;;  %s418_s27 = smov [#allocation2]  }
   0x9   :  { %v25_v10 = vld [vmem:[%s578_s1] sm:$0xff]  ;;  %340 = vmatprep.subr.mxu0 %v416_v1  ;;  %362 = vmatprep.subr.mxu1 %v416_v1  ;;  %v27_v14 = vld [vmem:[%s579_s2 + $0x8] sm:$0xff]  ;;  %v202_v15 = vld [vmem:[%s581_s4 + $0x50] sm:$0xff]  ;;  %s292_s28 = sshll.u32 %s418_s27, 4  ;;  %s293_s28 = int_to_ptr.vmem [resolvable:$true] %s292_s28 }
   0xa   :  { %341 = vmatpush3.msra.mxu0 %v30_v8  ;;  %363 = vmatpush3.msra.mxu1 %v204_v9  ;;  %v26_v16 = vld [vmem:[%s579_s2] sm:$0xff]  ;;  %v201_v17 = vld [vmem:[%s581_s4 + $0x48] sm:$0xff]  ;;  %v199_v20 = vld [vmem:[%s581_s4 + $0x38] sm:$0xff]  ;;  %p399_p1 = scmp.lt.s32.totalorder %s293_s28, %s293_s28 }
   0xb   :  { %343 = vmatmul.mubr.msk.f32.vlgmr.msra.gmra.mxu0 %vm35_vm1, %v25_v10  ;;  %345 = vmatprep.subr.mxu0 %v416_v1  ;;  %v24_v18 = vld [vmem:[%s577_s0] sm:$0xff]  ;;  %v198_v21 = vld [vmem:[%s581_s4 + $0x30] sm:$0xff]  ;;  %v197_v22 = vld [vmem:[%s581_s4 + $0x28] sm:$0xff] }
   0xc   :  { %346 = vmatpush3.msra.mxu0 %v29_v11  ;;  %353 = vmatprep.mubr.msk.f32.mxu0 %vm417_vm0, %v416_v1  ;;  %v200_v19 = vld [vmem:[%s581_s4 + $0x40] sm:$0xff]  ;;  %v195_v24 = vld [vmem:[%s581_s4 + $0x18] sm:$0xff]  ;;  %v194_v25 = vld [vmem:[%s581_s4 + $0x10] sm:$0xff] }
   0xd   :  { %347 = vmatprep.subr.mxu0 %v416_v1  ;;  %364 = vmatprep.subr.mxu1 %v416_v1  ;;  %v196_v23 = vld [vmem:[%s581_s4 + $0x20] sm:$0xff]  ;;  %v193_v26 = vld [vmem:[%s581_s4 + $0x8] sm:$0xff] }
   0xe   :  { %348 = vmatpush3.msra.mxu0 %v28_v12  ;;  %365 = vmatpush3.msra.mxu1 %v203_v13  ;;  %v192_v27 = vld [vmem:[%s581_s4] sm:$0xff]  ;;  %s394_s4 = scalar_lea.vmem %s293_s28, 128 }
   0xf   :  { %349 = vmatprep.subr.mxu0 %v416_v1  ;;  %366 = vmatprep.subr.mxu1 %v416_v1  ;;  %v302_v31 = vld [vmem:[%s580_s3] ss:$0 sm:$0xff]  ;;  %p395_p0 = scmp.ne.s32.totalorder %s293_s28, %s394_s4  ;;  %p400_p2 = scmp.lt.s32.totalorder %s394_s4, %s394_s4 }
  0x10   :  { %350 = vmatpush3.msra.mxu0 %v27_v14  ;;  %367 = vmatpush3.msra.mxu1 %v202_v15  ;;  %v303_v36 = vld [vmem:[%s582_s5] ss:$0 sm:$0xff] }
  0x11   :  { %351 = vmatprep.subr.mxu0 %v416_v1  ;;  %368 = vmatprep.subr.mxu1 %v416_v1  ;;  %p401_p3 = por %p400_p2, %p399_p1 }
  0x12   :  { %352 = vmatpush3.msra.mxu0 %v26_v16  ;;  %369 = vmatpush3.msra.mxu1 %v201_v17 }
  0x13   :  { %354 = vmatmul.mubr.msk.f32.vlgmr.msra.gmra.mxu0 %vm109_vm2, %v24_v18  ;;  %370 = vmatprep.subr.mxu1 %v416_v1  ;;  %p402_p4 = pnand %p401_p3, %p395_p0 }
  0x14   :  { %371 = vmatpush3.msra.mxu1 %v200_v19 }
  0x15   :  { %372 = vmatprep.subr.mxu1 %v416_v1 }
  0x16   :  { %373 = vmatpush3.msra.mxu1 %v199_v20 }
  0x17   :  { %374 = vmatprep.subr.mxu1 %v416_v1 }
  0x18   :  { %375 = vmatpush3.msra.mxu1 %v198_v21 }
  0x19   :  { %376 = vmatprep.subr.mxu1 %v416_v1 }
  0x1a   :  { %377 = vmatpush3.msra.mxu1 %v197_v22 }
  0x1b   :  { %378 = vmatprep.subr.mxu1 %v416_v1 }
  0x1c   :  { %379 = vmatpush3.msra.mxu1 %v196_v23 }
  0x1d   :  { %380 = vmatprep.subr.mxu1 %v416_v1 }
  0x1e   :  { %381 = vmatpush3.msra.mxu1 %v195_v24 }
  0x1f   :  { %382 = vmatprep.subr.mxu1 %v416_v1 }
  0x20   :  { %383 = vmatpush3.msra.mxu1 %v194_v25 }
  0x21   :  { %384 = vmatprep.subr.mxu1 %v416_v1 }
  0x22   :  { %385 = vmatpush3.msra.mxu1 %v193_v26 }
  0x23   :  { %386 = vmatprep.subr.mxu1 %v416_v1 }
  0x24   :  { %387 = vmatpush3.msra.mxu1 %v192_v27 }
  0xcb   :  { %v105_v28 = vpop.f32.mrf.mxu0 }
  0xcd   :  { %v344_v29 = vpop.f32.mrf.mxu0 }
  0xd3   :  { %v179_v30 = vpop.f32.mrf.mxu0 }
  0xd4   :  { %v180_v32 = vadd.f32 %v179_v30, %v105_v28 }
  0xd5   :  { %v355_v33 = vpop.f32.mrf.mxu0 }
  0xd6   :  { %v190_v34 = vadd.f32 %v302_v31, %v180_v32 }
  0xd8   :  { %v191_v35 = vmax.f32 %v190_v34, 0.0 }
  0xda   :  { %389 = vmatmul.mubr.f32.vlgmr.msra.gmra.mxu1 %v191_v35 }
 0x19a   :  { %v281_v37 = vpop.f32.mrf.mxu1 }
 0x19b   :  { %v282_v38 = vadd.f32 %v303_v36, %v281_v37 }
 0x19c   :  { %v390_v39 = vpop.f32.mrf.mxu1 }
 0x19d   :  { %285 = vst.msk [vmem:[#allocation2] sm:$0xff] %vm109_vm2, %v282_v38 }
 0x19e   :  { %405 = shalt.err (!%p402_p4)
}
 0x19f   :  { %295 = dma.vmem_to_hbm [thread:$0]  %s293_s28, 128, %s583_s6, [#allocation3]  }
 0x1a0   :  { %414 = dma.done.wait [#allocation3], 128  }
 0x1a1   :  { %415 = vsyncadd [#allocation3], 4294967168 }
 0x1a2   :  { %299 = vsyncpa [#allocation3], 1 }

</bundles_post_ra>
